<compile_context>
chip_gen: v7x
topology: tpu7x:2x2x1
jax: 0.10.0
libtpu: 0.0.40
codegen_flags: <defaults>
</compile_context>

<pallas_src>
import functools
import math

import jax
import jax.numpy as jnp
from jax import lax
from jax.experimental import pallas as pl
from jax.experimental.pallas import tpu as pltpu


def _attn_kernel(*refs, num_heads, head_dim, scale, emit_weights, shared_qkv,
                 unroll_heads):
    idx = 0
    xq_ref = refs[idx]; idx += 1                     # (1, tq, H) query tile
    if shared_qkv:
        xkv_ref = xq_ref                             # tq == S: same block is K/V
    else:
        xkv_ref = refs[idx]; idx += 1                # (1, S, H) full keys/values
    o_ref = refs[idx]; idx += 1                      # (1, tq, H)
    w_ref = refs[idx] if emit_weights else None      # (1, nH, tq, S)

    def one_head(q_h, kv_h):
        # Scale folded into Q: O(tq*Dh) multiply instead of O(tq*S) on scores.
        q_s = q_h * scale
        s = lax.dot_general(q_s, kv_h,
                            dimension_numbers=(((1,), (1,)), ((), ())),
                            preferred_element_type=jnp.float32)       # (tq, S) f32
        m = jnp.max(s, axis=-1, keepdims=True)
        p = jnp.exp(s - m)
        l = jnp.sum(p, axis=-1, keepdims=True)
        inv_l = pl.reciprocal(l, approx=True)                         # EUP slot
        inv_l = inv_l * (2.0 - l * inv_l)                             # Newton step
        w = p * inv_l
        w_lp = w.astype(xq_ref.dtype)                                 # cast once, reuse
        o_h = jnp.dot(w_lp, kv_h, preferred_element_type=jnp.float32)
        return w_lp, o_h

    if unroll_heads:
        # Lane-unaligned head_dim (< 128): static slices (compile-time offsets)
        # and direct per-head stores, so each head's (tq, S) tensors die at its
        # store instead of staying live until a final concatenate.
        q_all = xq_ref[0]                                             # (tq, H)
        kv_all = q_all if shared_qkv else xkv_ref[0]                  # (S,  H)
        for h in range(num_heads):
            lo = h * head_dim
            w_lp, o_h = one_head(q_all[:, lo:lo + head_dim],
                                 kv_all[:, lo:lo + head_dim])
            if emit_weights:
                w_ref[0, h] = w_lp
            o_ref[0, :, lo:lo + head_dim] = o_h.astype(o_ref.dtype)
    else:
        # Lane-aligned head_dim: fori_loop caps the working set at one head's
        # (tq, S) score/prob tile regardless of num_heads.
        def body(h, carry):
            lo = pl.multiple_of(h * head_dim, head_dim)
            w_lp, o_h = one_head(xq_ref[0, :, pl.ds(lo, head_dim)],
                                 xkv_ref[0, :, pl.ds(lo, head_dim)])
            if emit_weights:
                w_ref[0, h] = w_lp
            o_ref[0, :, pl.ds(lo, head_dim)] = o_h.astype(o_ref.dtype)
            return carry
        lax.fori_loop(0, num_heads, body, 0)


def _vmem_limit_bytes():
    """Per-generation scoped-VMEM request (leave headroom for compiler scratch)."""
    try:
        info = pltpu.get_tpu_info()
        cap = int(getattr(info, "vmem_capacity_bytes", 128 << 20))
    except Exception:  # not on TPU / older jaxlib
        cap = 128 << 20
    # 3/4 of physical: ~48 MiB on v7x (64 MiB), ~96 MiB on v5e/v6e (128 MiB).
    return int(max(16 << 20, min(cap * 3 // 4, 112 << 20)))


def _choose_tq(S, H, nH, itemsize, emit_weights, vmem_limit):
    """Largest q tile whose per-step working set fits the VMEM budget."""
    budget = int(vmem_limit * 0.7)

    def cost(tq):
        w = 2 * nH * tq * S * itemsize if emit_weights else 0   # weights block, 2 bufs
        io = 4 * tq * H * itemsize                              # q tile + out, 2 bufs
        kv = 2 * S * H * itemsize                               # full K/V block, 2 bufs
        inter = 4 * tq * S * 4                                  # live f32 score/prob
        return w + io + kv + inter

    cands = [S] + [t for t in (4096, 2048, 1024, 512, 256, 128, 64, 32, 16, 8)
                   if t < S and S % t == 0]
    for tq in cands:
        if cost(tq) <= budget:
            return tq
    return cands[-1]


def optimized_self_attention(hidden_states, num_attention_heads,
                             attention_mask=None, *, return_weights=True,
                             q_block=None):
    """hidden_states [B, S, H] -> (output [B, S, H], weights [B, nH, S, S] | None).

    Weights are emitted in the input dtype (matches PyTorch softmax dtype
    semantics for low-precision inputs); pass return_weights=False to skip the
    O(nH*S^2) writeback entirely.
    """
    assert attention_mask is None  # TODO(synk): mask support not needed here
    B, S, H = hidden_states.shape
    nH = num_attention_heads
    assert H % nH == 0
    Dh = H // nH
    scale = 1.0 / math.sqrt(Dh)
    dtype = hidden_states.dtype
    itemsize = jnp.dtype(dtype).itemsize

    vmem_limit = _vmem_limit_bytes()
    tq = q_block if q_block is not None else _choose_tq(
        S, H, nH, itemsize, return_weights, vmem_limit)
    assert S % tq == 0 and (tq % 8 == 0 or tq == S)
    nQ = S // tq
    shared = (nQ == 1)                 # q tile == full sequence: pass input once
    unroll_heads = (Dh % 128 != 0)     # lane-aligned heads use the fori_loop path

    kernel = functools.partial(
        _attn_kernel, num_heads=nH, head_dim=Dh, scale=scale,
        emit_weights=return_weights, shared_qkv=shared, unroll_heads=unroll_heads)

    in_specs = [pl.BlockSpec((1, tq, H), lambda b, q: (b, q, 0))]
    args = [hidden_states]
    if not shared:
        in_specs.append(pl.BlockSpec((1, S, H), lambda b, q: (b, 0, 0)))
        args.append(hidden_states)

    out_shape = [jax.ShapeDtypeStruct((B, S, H), dtype)]
    out_specs = [pl.BlockSpec((1, tq, H), lambda b, q: (b, q, 0))]
    if return_weights:
        out_shape.append(jax.ShapeDtypeStruct((B, nH, S, S), dtype))
        out_specs.append(pl.BlockSpec((1, nH, tq, S), lambda b, q: (b, 0, q, 0)))

    outs = pl.pallas_call(
        kernel,
        out_shape=tuple(out_shape),
        grid_spec=pltpu.PrefetchScalarGridSpec(
            num_scalar_prefetch=0,
            grid=(B, nQ),
            in_specs=in_specs,
            out_specs=tuple(out_specs),
        ),
        compiler_params=pltpu.CompilerParams(
            dimension_semantics=("parallel", "parallel"),
            vmem_limit_bytes=vmem_limit,
        ),
    )(*args)

    if return_weights:
        out, weights = outs
        return out, weights
    if isinstance(outs, (tuple, list)):
        (out,) = outs
    else:
        out = outs
    return out, None


def _reference(hidden_states, num_attention_heads):
    """Pure-JAX reference for correctness checking."""
    B, S, H = hidden_states.shape
    nH = num_attention_heads
    Dh = H // nH
    x = hidden_states.reshape(B, S, nH, Dh).transpose(0, 2, 1, 3)  # [B,nH,S,Dh]
    s = jnp.einsum("bhqd,bhkd->bhqk", x, x) / math.sqrt(Dh)
    w = jax.nn.softmax(s, axis=-1)
    o = jnp.einsum("bhqk,bhkd->bhqd", w, x)
    out = o.transpose(0, 2, 1, 3).reshape(B, S, H)
    return out, w


if __name__ == "__main__":
    # Test 1: module-consistent small shape (B=2, S=8, hidden=32, heads=4).
    B, S, H, nH = 2, 8, 32, 4
    x = jax.random.normal(jax.random.PRNGKey(0), (B, S, H), dtype=jnp.float32)
    out, w = optimized_self_attention(x, nH)
    out, w = jax.block_until_ready((out, w))
    ref_out, ref_w = _reference(x, nH)
    assert out.shape == (B, S, H) and w.shape == (B, nH, S, S)
    assert jnp.allclose(out, ref_out, atol=1e-5, rtol=1e-5)
    assert jnp.allclose(w, ref_w.astype(w.dtype), atol=1e-5, rtol=1e-5)

    # Test 2: lane-aligned heads (Dh=128) -> exercises the fori_loop head path.
    B2, S2, nH2, Dh2 = 1, 16, 2, 128
    x2 = jax.random.normal(jax.random.PRNGKey(1), (B2, S2, nH2 * Dh2),
                           dtype=jnp.float32)
    out2, w2 = optimized_self_attention(x2, nH2)
    out2, w2 = jax.block_until_ready((out2, w2))
    ref_out2, ref_w2 = _reference(x2, nH2)
    assert jnp.allclose(out2, ref_out2, atol=1e-4, rtol=1e-4)
    assert jnp.allclose(w2, ref_w2.astype(w2.dtype), atol=1e-5, rtol=1e-5)

    # Test 3: q-block tiling (S=32, tq=16 -> 2 q steps), with and without the
    # attention-weights output.
    B3, S3, H3, nH3 = 2, 32, 32, 4
    x3 = jax.random.normal(jax.random.PRNGKey(2), (B3, S3, H3), dtype=jnp.float32)
    out3, w3 = optimized_self_attention(x3, nH3, q_block=16)
    out3, w3 = jax.block_until_ready((out3, w3))
    ref_out3, ref_w3 = _reference(x3, nH3)
    assert jnp.allclose(out3, ref_out3, atol=1e-5, rtol=1e-5)
    assert jnp.allclose(w3, ref_w3.astype(w3.dtype), atol=1e-5, rtol=1e-5)

    out3_nw, w3_none = optimized_self_attention(x3, nH3, q_block=16,
                                                return_weights=False)
    out3_nw = jax.block_until_ready(out3_nw)
    assert w3_none is None
    assert jnp.allclose(out3_nw, ref_out3, atol=1e-5, rtol=1e-5)

    print("KERNEL_OK")
</pallas_src>

<mosaic_0001>
module attributes {stable_mosaic.version = 11 : i64} {
  func.func @_attn_kernel(%arg0: i32, %arg1: i32, %arg2: memref<1x8x32xf32, #tpu.memory_space<vmem>>, %arg3: memref<1x8x32xf32, #tpu.memory_space<vmem>>, %arg4: memref<1x4x8x8xf32, #tpu.memory_space<vmem>>) attributes {dimension_semantics = [#tpu.dimension_semantics<parallel>, #tpu.dimension_semantics<parallel>], iteration_bounds = array<i64: 2, 1>, scalar_prefetch = 0 : i64, scratch_operands = 0 : i64, tpu.core_type = #tpu.core_type<tc>, window_params = [{transform_indices = @transform_0, window_bounds = array<i64: 1, 8, 32>}, {transform_indices = @transform_1, window_bounds = array<i64: 1, 8, 32>}, {transform_indices = @transform_2, window_bounds = array<i64: 1, 4, 8, 8>}]} {
    %c0 = arith.constant 0 : index
    %c0_0 = arith.constant 0 : index
    %c0_1 = arith.constant 0 : index
    %0 = vector.load %arg2[%c0, %c0_0, %c0_1] : memref<1x8x32xf32, #tpu.memory_space<vmem>>, vector<1x8x32xf32>
    %1 = vector.shape_cast %0 : vector<1x8x32xf32> to vector<8x32xf32>
    %2 = vector.extract_strided_slice %1 {offsets = [0, 0], sizes = [8, 8], strides = [1, 1]} : vector<8x32xf32> to vector<8x8xf32>
    %3 = vector.extract_strided_slice %1 {offsets = [0, 0], sizes = [8, 8], strides = [1, 1]} : vector<8x32xf32> to vector<8x8xf32>
    %cst = arith.constant 0.353553385 : f32
    %4 = vector.broadcast %cst : f32 to vector<8x8xf32>
    %5 = arith.mulf %2, %4 : vector<8x8xf32>
    %cst_2 = arith.constant dense<0.000000e+00> : vector<8x8xf32>
    %6 = tpu.matmul %5, %3, %cst_2 {dimension_numbers = #tpu.dot_dimension_numbers<[1], [1], [0], [0], [0, 0, 1, 0], [], []>} : vector<8x8xf32>, vector<8x8xf32>, vector<8x8xf32> -> vector<8x8xf32>
    %cst_3 = arith.constant dense<0xFF800000> : vector<8xf32>
    %7 = vector.multi_reduction <maximumf>, %6, %cst_3 [1] : vector<8x8xf32> to vector<8xf32>
    %8 = vector.shape_cast %7 : vector<8xf32> to vector<8x1xf32>
    %9 = vector.broadcast %8 : vector<8x1xf32> to vector<8x8xf32>
    %10 = arith.subf %6, %9 : vector<8x8xf32>
    %11 = math.exp %10 : vector<8x8xf32>
    %cst_4 = arith.constant dense<0.000000e+00> : vector<8xf32>
    %12 = vector.multi_reduction <add>, %11, %cst_4 [1] : vector<8x8xf32> to vector<8xf32>
    %13 = vector.shape_cast %12 : vector<8xf32> to vector<8x1xf32>
    %14 = tpu.reciprocal %13 {approx = true} : vector<8x1xf32> -> vector<8x1xf32>
    %15 = arith.mulf %13, %14 : vector<8x1xf32>
    %cst_5 = arith.constant 2.000000e+00 : f32
    %16 = vector.broadcast %cst_5 : f32 to vector<8x1xf32>
    %17 = arith.subf %16, %15 : vector<8x1xf32>
    %18 = arith.mulf %14, %17 : vector<8x1xf32>
    %19 = vector.broadcast %18 : vector<8x1xf32> to vector<8x8xf32>
    %20 = arith.mulf %11, %19 : vector<8x8xf32>
    %cst_6 = arith.constant dense<0.000000e+00> : vector<8x8xf32>
    %21 = tpu.matmul %20, %3, %cst_6 {dimension_numbers = #tpu.dot_dimension_numbers<[1], [0], [0], [1], [0, 0, 1, 1], [], []>} : vector<8x8xf32>, vector<8x8xf32>, vector<8x8xf32> -> vector<8x8xf32>
    %c0_7 = arith.constant 0 : index
    %c0_8 = arith.constant 0 : index
    %c0_9 = arith.constant 0 : index
    %c0_10 = arith.constant 0 : index
    %22 = vector.load %arg4[%c0_7, %c0_8, %c0_9, %c0_10] : memref<1x4x8x8xf32, #tpu.memory_space<vmem>>, vector<1x1x8x8xf32>
    %23 = vector.shape_cast %22 : vector<1x1x8x8xf32> to vector<8x8xf32>
    %24 = vector.shape_cast %20 : vector<8x8xf32> to vector<1x1x8x8xf32>
    tpu.vector_store %arg4[%c0_7, %c0_8, %c0_9, %c0_10], %24 {strides = array<i32>} : memref<1x4x8x8xf32, #tpu.memory_space<vmem>>, vector<1x1x8x8xf32>,
    %c0_11 = arith.constant 0 : index
    %c0_12 = arith.constant 0 : index
    %c0_13 = arith.constant 0 : index
    %25 = vector.load %arg3[%c0_11, %c0_12, %c0_13] : memref<1x8x32xf32, #tpu.memory_space<vmem>>, vector<1x8x8xf32>
    %26 = vector.shape_cast %25 : vector<1x8x8xf32> to vector<8x8xf32>
    %27 = vector.shape_cast %21 : vector<8x8xf32> to vector<1x8x8xf32>
    tpu.vector_store %arg3[%c0_11, %c0_12, %c0_13], %27 {strides = array<i32>} : memref<1x8x32xf32, #tpu.memory_space<vmem>>, vector<1x8x8xf32>,
    %28 = vector.extract_strided_slice %1 {offsets = [0, 8], sizes = [8, 8], strides = [1, 1]} : vector<8x32xf32> to vector<8x8xf32>
    %29 = vector.extract_strided_slice %1 {offsets = [0, 8], sizes = [8, 8], strides = [1, 1]} : vector<8x32xf32> to vector<8x8xf32>
    %cst_14 = arith.constant 0.353553385 : f32
    %30 = vector.broadcast %cst_14 : f32 to vector<8x8xf32>
    %31 = arith.mulf %28, %30 : vector<8x8xf32>
    %cst_15 = arith.constant dense<0.000000e+00> : vector<8x8xf32>
    %32 = tpu.matmul %31, %29, %cst_15 {dimension_numbers = #tpu.dot_dimension_numbers<[1], [1], [0], [0], [0, 0, 1, 0], [], []>} : vector<8x8xf32>, vector<8x8xf32>, vector<8x8xf32> -> vector<8x8xf32>
    %cst_16 = arith.constant dense<0xFF800000> : vector<8xf32>
    %33 = vector.multi_reduction <maximumf>, %32, %cst_16 [1] : vector<8x8xf32> to vector<8xf32>
    %34 = vector.shape_cast %33 : vector<8xf32> to vector<8x1xf32>
    %35 = vector.broadcast %34 : vector<8x1xf32> to vector<8x8xf32>
    %36 = arith.subf %32, %35 : vector<8x8xf32>
    %37 = math.exp %36 : vector<8x8xf32>
    %cst_17 = arith.constant dense<0.000000e+00> : vector<8xf32>
    %38 = vector.multi_reduction <add>, %37, %cst_17 [1] : vector<8x8xf32> to vector<8xf32>
    %39 = vector.shape_cast %38 : vector<8xf32> to vector<8x1xf32>
    %40 = tpu.reciprocal %39 {approx = true} : vector<8x1xf32> -> vector<8x1xf32>
    %41 = arith.mulf %39, %40 : vector<8x1xf32>
    %cst_18 = arith.constant 2.000000e+00 : f32
    %42 = vector.broadcast %cst_18 : f32 to vector<8x1xf32>
    %43 = arith.subf %42, %41 : vector<8x1xf32>
    %44 = arith.mulf %40, %43 : vector<8x1xf32>
    %45 = vector.broadcast %44 : vector<8x1xf32> to vector<8x8xf32>
    %46 = arith.mulf %37, %45 : vector<8x8xf32>
    %cst_19 = arith.constant dense<0.000000e+00> : vector<8x8xf32>
    %47 = tpu.matmul %46, %29, %cst_19 {dimension_numbers = #tpu.dot_dimension_numbers<[1], [0], [0], [1], [0, 0, 1, 1], [], []>} : vector<8x8xf32>, vector<8x8xf32>, vector<8x8xf32> -> vector<8x8xf32>
    %c0_20 = arith.constant 0 : index
    %c1 = arith.constant 1 : index
    %c0_21 = arith.constant 0 : index
    %c0_22 = arith.constant 0 : index
    %48 = vector.load %arg4[%c0_20, %c1, %c0_21, %c0_22] : memref<1x4x8x8xf32, #tpu.memory_space<vmem>>, vector<1x1x8x8xf32>
    %49 = vector.shape_cast %48 : vector<1x1x8x8xf32> to vector<8x8xf32>
    %50 = vector.shape_cast %46 : vector<8x8xf32> to vector<1x1x8x8xf32>
    tpu.vector_store %arg4[%c0_20, %c1, %c0_21, %c0_22], %50 {strides = array<i32>} : memref<1x4x8x8xf32, #tpu.memory_space<vmem>>, vector<1x1x8x8xf32>,
    %c0_23 = arith.constant 0 : index
    %c0_24 = arith.constant 0 : index
    %c8 = arith.constant 8 : index
    %51 = vector.load %arg3[%c0_23, %c0_24, %c8] : memref<1x8x32xf32, #tpu.memory_space<vmem>>, vector<1x8x8xf32>
    %52 = vector.shape_cast %51 : vector<1x8x8xf32> to vector<8x8xf32>
    %53 = vector.shape_cast %47 : vector<8x8xf32> to vector<1x8x8xf32>
    tpu.vector_store %arg3[%c0_23, %c0_24, %c8], %53 {strides = array<i32>} : memref<1x8x32xf32, #tpu.memory_space<vmem>>, vector<1x8x8xf32>,
    %54 = vector.extract_strided_slice %1 {offsets = [0, 16], sizes = [8, 8], strides = [1, 1]} : vector<8x32xf32> to vector<8x8xf32>
    %55 = vector.extract_strided_slice %1 {offsets = [0, 16], sizes = [8, 8], strides = [1, 1]} : vector<8x32xf32> to vector<8x8xf32>
    %cst_25 = arith.constant 0.353553385 : f32
    %56 = vector.broadcast %cst_25 : f32 to vector<8x8xf32>
    %57 = arith.mulf %54, %56 : vector<8x8xf32>
    %cst_26 = arith.constant dense<0.000000e+00> : vector<8x8xf32>
    %58 = tpu.matmul %57, %55, %cst_26 {dimension_numbers = #tpu.dot_dimension_numbers<[1], [1], [0], [0], [0, 0, 1, 0], [], []>} : vector<8x8xf32>, vector<8x8xf32>, vector<8x8xf32> -> vector<8x8xf32>
    %cst_27 = arith.constant dense<0xFF800000> : vector<8xf32>
    %59 = vector.multi_reduction <maximumf>, %58, %cst_27 [1] : vector<8x8xf32> to vector<8xf32>
    %60 = vector.shape_cast %59 : vector<8xf32> to vector<8x1xf32>
    %61 = vector.broadcast %60 : vector<8x1xf32> to vector<8x8xf32>
    %62 = arith.subf %58, %61 : vector<8x8xf32>
    %63 = math.exp %62 : vector<8x8xf32>
    %cst_28 = arith.constant dense<0.000000e+00> : vector<8xf32>
    %64 = vector.multi_reduction <add>, %63, %cst_28 [1] : vector<8x8xf32> to vector<8xf32>
    %65 = vector.shape_cast %64 : vector<8xf32> to vector<8x1xf32>
    %66 = tpu.reciprocal %65 {approx = true} : vector<8x1xf32> -> vector<8x1xf32>
    %67 = arith.mulf %65, %66 : vector<8x1xf32>
    %cst_29 = arith.constant 2.000000e+00 : f32
    %68 = vector.broadcast %cst_29 : f32 to vector<8x1xf32>
    %69 = arith.subf %68, %67 : vector<8x1xf32>
    %70 = arith.mulf %66, %69 : vector<8x1xf32>
    %71 = vector.broadcast %70 : vector<8x1xf32> to vector<8x8xf32>
    %72 = arith.mulf %63, %71 : vector<8x8xf32>
    %cst_30 = arith.constant dense<0.000000e+00> : vector<8x8xf32>
    %73 = tpu.matmul %72, %55, %cst_30 {dimension_numbers = #tpu.dot_dimension_numbers<[1], [0], [0], [1], [0, 0, 1, 1], [], []>} : vector<8x8xf32>, vector<8x8xf32>, vector<8x8xf32> -> vector<8x8xf32>
    %c0_31 = arith.constant 0 : index
    %c2 = arith.constant 2 : index
    %c0_32 = arith.constant 0 : index
    %c0_33 = arith.constant 0 : index
    %74 = vector.load %arg4[%c0_31, %c2, %c0_32, %c0_33] : memref<1x4x8x8xf32, #tpu.memory_space<vmem>>, vector<1x1x8x8xf32>
    %75 = vector.shape_cast %74 : vector<1x1x8x8xf32> to vector<8x8xf32>
    %76 = vector.shape_cast %72 : vector<8x8xf32> to vector<1x1x8x8xf32>
    tpu.vector_store %arg4[%c0_31, %c2, %c0_32, %c0_33], %76 {strides = array<i32>} : memref<1x4x8x8xf32, #tpu.memory_space<vmem>>, vector<1x1x8x8xf32>,
    %c0_34 = arith.constant 0 : index
    %c0_35 = arith.constant 0 : index
    %c16 = arith.constant 16 : index
    %77 = vector.load %arg3[%c0_34, %c0_35, %c16] : memref<1x8x32xf32, #tpu.memory_space<vmem>>, vector<1x8x8xf32>
    %78 = vector.shape_cast %77 : vector<1x8x8xf32> to vector<8x8xf32>
    %79 = vector.shape_cast %73 : vector<8x8xf32> to vector<1x8x8xf32>
    tpu.vector_store %arg3[%c0_34, %c0_35, %c16], %79 {strides = array<i32>} : memref<1x8x32xf32, #tpu.memory_space<vmem>>, vector<1x8x8xf32>,
    %80 = vector.extract_strided_slice %1 {offsets = [0, 24], sizes = [8, 8], strides = [1, 1]} : vector<8x32xf32> to vector<8x8xf32>
    %81 = vector.extract_strided_slice %1 {offsets = [0, 24], sizes = [8, 8], strides = [1, 1]} : vector<8x32xf32> to vector<8x8xf32>
    %cst_36 = arith.constant 0.353553385 : f32
    %82 = vector.broadcast %cst_36 : f32 to vector<8x8xf32>
    %83 = arith.mulf %80, %82 : vector<8x8xf32>
    %cst_37 = arith.constant dense<0.000000e+00> : vector<8x8xf32>
    %84 = tpu.matmul %83, %81, %cst_37 {dimension_numbers = #tpu.dot_dimension_numbers<[1], [1], [0], [0], [0, 0, 1, 0], [], []>} : vector<8x8xf32>, vector<8x8xf32>, vector<8x8xf32> -> vector<8x8xf32>
    %cst_38 = arith.constant dense<0xFF800000> : vector<8xf32>
    %85 = vector.multi_reduction <maximumf>, %84, %cst_38 [1] : vector<8x8xf32> to vector<8xf32>
    %86 = vector.shape_cast %85 : vector<8xf32> to vector<8x1xf32>
    %87 = vector.broadcast %86 : vector<8x1xf32> to vector<8x8xf32>
    %88 = arith.subf %84, %87 : vector<8x8xf32>
    %89 = math.exp %88 : vector<8x8xf32>
    %cst_39 = arith.constant dense<0.000000e+00> : vector<8xf32>
    %90 = vector.multi_reduction <add>, %89, %cst_39 [1] : vector<8x8xf32> to vector<8xf32>
    %91 = vector.shape_cast %90 : vector<8xf32> to vector<8x1xf32>
    %92 = tpu.reciprocal %91 {approx = true} : vector<8x1xf32> -> vector<8x1xf32>
    %93 = arith.mulf %91, %92 : vector<8x1xf32>
    %cst_40 = arith.constant 2.000000e+00 : f32
    %94 = vector.broadcast %cst_40 : f32 to vector<8x1xf32>
    %95 = arith.subf %94, %93 : vector<8x1xf32>
    %96 = arith.mulf %92, %95 : vector<8x1xf32>
    %97 = vector.broadcast %96 : vector<8x1xf32> to vector<8x8xf32>
    %98 = arith.mulf %89, %97 : vector<8x8xf32>
    %cst_41 = arith.constant dense<0.000000e+00> : vector<8x8xf32>
    %99 = tpu.matmul %98, %81, %cst_41 {dimension_numbers = #tpu.dot_dimension_numbers<[1], [0], [0], [1], [0, 0, 1, 1], [], []>} : vector<8x8xf32>, vector<8x8xf32>, vector<8x8xf32> -> vector<8x8xf32>
    %c0_42 = arith.constant 0 : index
    %c3 = arith.constant 3 : index
    %c0_43 = arith.constant 0 : index
    %c0_44 = arith.constant 0 : index
    %100 = vector.load %arg4[%c0_42, %c3, %c0_43, %c0_44] : memref<1x4x8x8xf32, #tpu.memory_space<vmem>>, vector<1x1x8x8xf32>
    %101 = vector.shape_cast %100 : vector<1x1x8x8xf32> to vector<8x8xf32>
    %102 = vector.shape_cast %98 : vector<8x8xf32> to vector<1x1x8x8xf32>
    tpu.vector_store %arg4[%c0_42, %c3, %c0_43, %c0_44], %102 {strides = array<i32>} : memref<1x4x8x8xf32, #tpu.memory_space<vmem>>, vector<1x1x8x8xf32>,
    %c0_45 = arith.constant 0 : index
    %c0_46 = arith.constant 0 : index
    %c24 = arith.constant 24 : index
    %103 = vector.load %arg3[%c0_45, %c0_46, %c24] : memref<1x8x32xf32, #tpu.memory_space<vmem>>, vector<1x8x8xf32>
    %104 = vector.shape_cast %103 : vector<1x8x8xf32> to vector<8x8xf32>
    %105 = vector.shape_cast %99 : vector<8x8xf32> to vector<1x8x8xf32>
    tpu.vector_store %arg3[%c0_45, %c0_46, %c24], %105 {strides = array<i32>} : memref<1x8x32xf32, #tpu.memory_space<vmem>>, vector<1x8x8xf32>,
    return
  }
  func.func @transform_0(%arg0: i32, %arg1: i32) -> (i32, i32, i32) {
    %c0_i32 = arith.constant 0 : i32
    %c0_i32_0 = arith.constant 0 : i32
    return %arg0, %arg1, %c0_i32 : i32, i32, i32
  }
  func.func @transform_1(%arg0: i32, %arg1: i32) -> (i32, i32, i32) {
    %c0_i32 = arith.constant 0 : i32
    %c0_i32_0 = arith.constant 0 : i32
    return %arg0, %arg1, %c0_i32 : i32, i32, i32
  }
  func.func @transform_2(%arg0: i32, %arg1: i32) -> (i32, i32, i32, i32) {
    %c0_i32 = arith.constant 0 : i32
    %c0_i32_0 = arith.constant 0 : i32
    %c0_i32_1 = arith.constant 0 : i32
    return %arg0, %c0_i32, %arg1, %c0_i32_0 : i32, i32, i32, i32
  }
}

</mosaic_0001>

<bundles_post_ra>
// kernel: tpu_custom_call.1
= control target key start
LH: loop header
LB: loop body
LE: loop exit
PB: predicated region body
PF: predicated region fallthrough
CT: control target
= control target key end

     0   :  { %8 = vsyncpa [#allocation3], 0  ;;  %s1666_s0 = inlined_call_operand.hbm [shape: f32[2,8,32], index: 0, kind: input, shape index: {}]   ;;  %s1667_s1 = inlined_call_operand.hbm [shape: f32[2,8,32], index: 1, kind: output, shape index: {0}]   ;;  %s1668_s2 = inlined_call_operand.hbm [shape: f32[2,4,8,8], index: 2, kind: output, shape index: {1}]  }
   0x1   :  { %10 = vsyncpa [#allocation3 + $0x1], 0 }
   0x2   :  { %11 = vsyncpa [#allocation4], 0 }
   0x3   :  { %13 = vsyncpa [#allocation4 + $0x1], 0 }
   0x4   :  { %14 = vsyncpa [#allocation7], 0 }
   0x5   :  { %16 = vsyncpa [#allocation7 + $0x1], 0  ;;  %s1384_s9 = smov 0   ;;  %s1386_s10 = smov 0  }
   0x6   :  { %s1388_s11 = smov 0   ;;  %s1390_s12 = smov 0  }
   0x7   :  { %s1392_s13 = smov 0   ;;  %s1394_s14 = smov 0  }
   0x8 LB: > { %s1030_s15 = sadd.s32 4294967295, %s1355_s14   ;;  %s1031_s16 = sadd.s32 4294967294, %s1355_s14   ;;  %s1355_s14 = sphi %s1394_s14, %s22_s14   ;;  %s1351_s13 = sphi %s1392_s13, %s1684_s13   ;;  %s1347_s12 = sphi %s1390_s12, %s1683_s12   ;;  %s1343_s11 = sphi %s1388_s11, %s1682_s11   ;;  %s1339_s10 = sphi %s1386_s10, %s1681_s10   ;;  %s1335_s9 = sphi %s1384_s9, %s1680_s9  }
   0x9   : > { %s34_s17 = sadd.s32 1, %s1351_s13  ;;  %s43_s18 = sadd.s32 1, %s1343_s11 }
   0xa   : > { %p36_p0 = scmp.ge.s32.totalorder %s34_s17, 2  ;;  %p50_p1 = scmp.ne.s32.totalorder %s1343_s11, %s1339_s10 }
   0xb   : > { %p51_p2 = scmp.eq.s32.totalorder %s1355_s14, 0  ;;  %p56_p3 = scmp.ne.s32.totalorder %s1339_s10, %s1335_s9 }
   0xc   : > { %s1686_s17 = smov (%p36_p0, %s34_s17), 0  ;;  %p57_p5 = scmp.eq.s32.totalorder %s1030_s15, 0 }
   0xd   : > { %p1425_p4 = por %p51_p2, %p50_p1  ;;  %s38_s20 = ssub.s32 %s1351_s13, %s1686_s17 }
   0xe   : > { %p82_p6 = scmp.eq.s32.totalorder %s1030_s15, 1  ;;  %p41_p7 = scmp.eq.s32.totalorder %s38_s20, 0 }
   0xf   : > { %p1431_p8 = por %p57_p5, %p56_p3  ;;  %p88_p10 = scmp.eq.s32.totalorder %s1031_s16, 1 }
  0x10   : > { %p1435_p9 = por %p82_p6, %p50_p1  ;;  %p1136_p13 = scmp.lt.s32.totalorder %s1355_s14, 2 }
  0x11   : > { %s1440_s23 = scalar_select %p41_p7, %s1343_s11, %s43_s18  }
  0x12   : > { %s1672_s22 = scalar_select %p1435_p9, 1, 0 }
  0x13   : > { %p1442_p11 = por %p88_p10, %p56_p3  ;;  %s136_s25 = sand.u32 1, %s1343_s11  }
  0x14   : > { %s1034_s26 = sshll.u32 %s136_s25, 3  ;;  %s1035_s27 = sshll.u32 %s1351_s13, 7 }
  0x15   : > { %s1673_s24 = scalar_select %p1442_p11, 1, 0 }
  0x16   : > { %s1453_s30 = scalar_lea.hbm %s1666_s0, %s1035_s27  ;;  %s140_s3 = scalar_lea.vmem [#allocation2], %s1034_s26 }
  0x17   : > { %s148_s4 = sshll.u32 %s140_s3, 4  ;;  %p1459_p0 = pnand %p1136_p13, %p1425_p4  ;;  %s1455_s4 = int_to_ptr.vmem [resolvable:$true] %s148_s4 }
  0x18   : > { %s137_s6 = scalar_lea.sflag [#allocation3], %s136_s25  ;;  %s1211_s7 = scalar_lea.hbm %s1453_s30, 128 }
  0x19   : > { %p1212_p3 = scmp.ne.s32.totalorder %s1453_s30, %s1211_s7  ;;  %p1213_p5 = pneg %p1459_p0 }
  0x1a   : > { %s1216_s16 = scalar_lea.hbm %s1666_s0, 256  ;;  %p1217_p4 = scmp.lt.u32.totalorder %s1453_s30, %s1666_s0 }
  0x1b   : > { %p1214_p6 = pnand %p1213_p5, %p1212_p3  ;;  %p1218_p10 = scmp.lt.u32.totalorder %s1216_s16, %s1211_s7 }
  0x1c   : > { %p1220_p12 = scmp.lt.u32.totalorder %s1211_s7, %s1453_s30 }
  0x1d   : > { %p1215_p7 = pneg %p1214_p6  ;;  %p1219_p13 = por %p1218_p10, %p1217_p4 }
  0x1f   : > { %p1221_p1 = por %p1220_p12, %p1219_p13 }
  0x21   : > { %p1222_p2 = pnand %p1221_p1, %p1215_p7 }
  0x23   : > { %1225 = shalt.err (!%p1222_p2)
}
  0x24   : > { %s1226_s20 = scalar_lea.vmem %s1455_s4, 128  ;;  %s1357_s25 = smov [#allocation2]  }
  0x25   : > { %p1227_p3 = scmp.ne.s32.totalorder %s1455_s4, %s1226_s20  ;;  %s1231_s26 = sshll.u32 %s1357_s25, 4  ;;  %s1232_s26 = int_to_ptr.vmem [resolvable:$false] %s1231_s26 }
  0x26   : > { %s1233_s27 = scalar_lea.vmem %s1232_s26, 256  ;;  %p1234_p9 = scmp.lt.s32.totalorder %s1455_s4, %s1232_s26 }
  0x27   : > { %p1229_p6 = pnand %p1227_p3, %p1213_p5  ;;  %p1235_p4 = scmp.lt.s32.totalorder %s1233_s27, %s1226_s20 }
  0x29   : > { %p1230_p11 = pneg %p1229_p6  ;;  %p1236_p10 = por %p1235_p4, %p1234_p9 }
  0x2b   : > { %p1237_p12 = pnand %p1236_p10, %p1230_p11 }
  0x2d   : > { %1240 = shalt.err (!%p1237_p12)
}
  0x2e   : > { %1128 = dma.hbm_to_vmem [thread:$0]  (!%p1459_p0), %s1453_s30, 128, %s1455_s4, %s137_s6  }
  0x2f   : > { %p1675_p1 = scmp.lt.s32.totalorder %s1355_s14, 3  ;;  %p1676_p2 = scmp.ge.s32.totalorder %s1355_s14, 1 }
  0x31   : > { %p154_p5 = pnand %p1676_p2, %p1675_p1 }
  0x32   : > { %s1495_s28 = sand.u32 (!%p154_p5), 1, %s1339_s10  }
  0x33   : > { %157 = sbr.rel (%p154_p5) target bundleno = 1493 (0x5d5), region = 24  ;;  %s1037_s29 = sshll.u32 (!%p154_p5), %s1495_s28, 3 }
  0x34   : > { %s160_s3 = scalar_lea.sflag (!%p154_p5), [#allocation3], %s1495_s28  ;;  %s163_s5 = scalar_lea.vmem (!%p154_p5), [#allocation2], %s1037_s29 }
  0x3a   : > { %1322 = dma.done.wait (%p1431_p8), %s160_s3, 128  }
  0x3b   : > { %1324 = vsyncadd (%p1431_p8), %s160_s3, 4294967168  ;;  %v1358_v0 = vmov 0.0   ;;  %vm1359_vm0 = vmmov 0   ;;  %vm191_vm1 = vcmask 64512   ;;  %v189_v1 = vld [vmem:[%s163_s5] sm:$0xff]  ;;  %s1360_s21 = smov 120  }
  0x3c   : > { %1079 = vmatprep.subr.mxu0 %v1358_v0  ;;  %1081 = vmatprep.mubr.msk.f32.mxu0 %vm1359_vm0, %v1358_v0  ;;  %v190_v2 = vmul.f32 0.35355338, %v189_v1  ;;  %s1361_s30 = smov 112   ;;  %s1362_s4 = smov 104  }
  0x3d   : > { %1084 = vmatprep.subr.mxu1 %v1358_v0  ;;  %1086 = vmatprep.mubr.msk.f32.mxu1 %vm1359_vm0, %v1358_v0  ;;  %s1039_s6 = sshll.u32 %s1495_s28, 5  ;;  %s1548_s8 = scalar_lea.vmem [#allocation5], %s1037_s29 }
  0x3e   : > { %1080 = vmatpush3.xpose.msk.msra.mxu0 %vm191_vm1, %v189_v1  ;;  %1085 = vmatpush3.msra.mxu1 %v189_v1  ;;  %s1521_s7 = scalar_lea.vmem [#allocation6], %s1039_s6  ;;  %s1062_s15 = sshll.u32 %s1347_s12, 9 }
  0x3f   : > { %1094 = vmatprep.subr.mxu0 %v1358_v0  ;;  %1089 = vmatprep.subr.mxu1 %v1358_v0  ;;  %s913_s16 = sshll.u32 %s1521_s7, 4  ;;  %s1579_s20 = scalar_lea.hbm %s1668_s2, %s1062_s15  ;;  %s1581_s16 = int_to_ptr.vmem [resolvable:$true] %s913_s16 }
  0x40   : > { %359 = vrot.lane.b32.xlu1 %v189_v1, %s1360_s21  ;;  %s1363_s25 = smov 8   ;;  %s885_s26 = scalar_lea.sflag [#allocation7], %s1495_s28 }
  0x41   : > { %1082 = vmatmul.mubr.msk.f32.vlgmr.msra.gmra.mrb[0].mxu0 %vm191_vm1, %v190_v2  ;;  %s1241_s27 = scalar_lea.vmem %s1581_s16, 512  ;;  %p1677_p9 = scmp.ne.s32.totalorder %s1672_s22, 0 }
  0x42   : > { %1096 = vmatprep.mubr.msk.f32.mxu0 %vm1359_vm0, %v1358_v0  ;;  %p1242_p8 = scmp.ne.s32.totalorder %s1581_s16, %s1241_s27  ;;  %s1364_s29 = smov [#allocation6]  }
  0x43   : > { %s1245_s3 = sshll.u32 %s1364_s29, 4  ;;  %s1246_s3 = int_to_ptr.vmem [resolvable:$false] %s1245_s3 }
  0x44   : > { %357 = vrot.lane.b32.xlu1 %v190_v2, %s1360_s21  ;;  %p1243_p11 = pnand %p1242_p8, %p1677_p9  ;;  %s1247_s5 = scalar_lea.vmem %s1246_s3, 1024 }
  0x45   : > { %p1248_p7 = scmp.lt.s32.totalorder %s1581_s16, %s1246_s3  ;;  %p1249_p13 = scmp.lt.s32.totalorder %s1247_s5, %s1241_s27 }
  0x46   : > { %p1244_p0 = pneg %p1243_p11 }
  0x47   : > { %p1250_p3 = por %p1249_p13, %p1248_p7 }
  0x48   : > { %531 = vrot.lane.b32.xlu1 %v190_v2, %s1361_s30 }
  0x49   : > { %p1251_p6 = pnand %p1250_p3, %p1244_p0 }
  0x4c   : > { %707 = vrot.lane.b32.xlu1 %v189_v1, %s1362_s4 }
  0x50   : > { %705 = vrot.lane.b32.xlu1 %v190_v2, %s1362_s4 }
  0xb2   : > { %v360_v11 = vpop.permute.xlu1 %359 }
  0xb3   : > { %1095 = vmatpush3.msra.mxu0 %v360_v11 }
  0xb4   : > { %1104 = vmatprep.subr.mxu0 %v1358_v0 }
  0xb6   : > { %v358_v14 = vpop.permute.xlu1 %357 }
  0xba   : > { %v532_v18 = vpop.permute.xlu1 %531 }
  0xbe   : > { %v1532_v21 = vpop.permute.xlu1 %707 }
  0xc2   : > { %v706_v22 = vpop.permute.xlu1 %705 }
 0x114   : > { %v264_v3 = vpop.f32.mrb[0].mxu0 }
 0x115   : > { %v1083_v4 = vpop.f32.mrb[1].mxu0  ;;  %v268_v5 = vsel %vm191_vm1, %v264_v3, -inf }
 0x116   : > { %269 = vmax.xlane.f32.xlu0 %v268_v5 }
 0x1a3   : > { %v270_v6 = vpop.xlane.xlu0 %269 }
 0x1a4   : > { %v271_v7 = vsub.f32 %v264_v3, %v270_v6 }
 0x1a6   : > { %v272_v8 = vmul.f32 1.442695, %v271_v7 }
 0x1a8   : > { %1195 = vpow2.f32 %v272_v8 }
 0x1b2   : > { %v1196_v9 = vpop.eup %1195 }
 0x1b3   : > { %v274_v10 = vsel %vm191_vm1, %v1196_v9, 0.0 }
 0x1b4   : > { %275 = vadd.xlane.f32.xlu0 %v274_v10 }
 0x1ca   : > { %533 = vrot.lane.b32.xlu0 %v189_v1, %s1361_s30 }
 0x241   : > { %v276_v12 = vpop.xlane.xlu0 %275 }
 0x242   : > { %1197 = vrcp.f32 %v276_v12 }
 0x245   : > { %v1530_v20 = vpop.permute.xlu0 %533 }
 0x24c   : > { %v1198_v13 = vpop.eup %1197 }
 0x24d   : > { %v278_v15 = vmul.f32 %v1198_v13, %v276_v12 }
 0x24f   : > { %v279_v16 = vsub.f32 2.0, %v278_v15 }
 0x251   : > { %v280_v17 = vmul.f32 %v1198_v13, %v279_v16 }
 0x253   : > { %v281_v19 = vmul.f32 %v1196_v9, %v280_v17 }
 0x255   : > { %355 = vst.msk [vmem:[%s1521_s7] sm:$0xff] %vm191_vm1, %v281_v19  ;;  %1087 = vmatmul.mubr.msk.f32.vlgmr.msra.gmra.mrb[0].mxu1 %vm191_vm1, %v281_v19 }
 0x256   : > { %1090 = vmatpush3.xpose.msk.msra.mxu1 %vm191_vm1, %v360_v11  ;;  %1091 = vmatprep.mubr.msk.f32.mxu1 %vm1359_vm0, %v1358_v0 }
 0x257   : > { %1099 = vmatprep.subr.mxu1 %v1358_v0 }
 0x259   : > { %1092 = vmatmul.mubr.msk.f32.vlgmr.msra.gmra.mrb[2].mxu1 %vm191_vm1, %v358_v14 }
 0x25a   : > { %1100 = vmatpush3.xpose.msk.msra.mxu1 %vm191_vm1, %v1530_v20  ;;  %1101 = vmatprep.mubr.msk.f32.mxu1 %vm1359_vm0, %v1358_v0 }
 0x25b   : > { %1109 = vmatprep.subr.mxu1 %v1358_v0 }
 0x25d   : > { %1102 = vmatmul.mubr.msk.f32.vlgmr.msra.gmra.mrb[4].mxu1 %vm191_vm1, %v532_v18 }
 0x25e   : > { %1110 = vmatpush3.xpose.msk.msra.mxu1 %vm191_vm1, %v1532_v21  ;;  %1111 = vmatprep.mubr.msk.f32.mxu1 %vm1359_vm0, %v1358_v0 }
 0x261   : > { %1112 = vmatmul.mubr.msk.f32.vlgmr.msra.gmra.mrb[6].mxu1 %vm191_vm1, %v706_v22 }
 0x328   : > { %v351_v23 = vpop.f32.mrb[0].mxu1 }
 0x329   : > { %356 = vst.msk [vmem:[%s1548_s8] sm:$0xff] %vm191_vm1, %v351_v23  ;;  %v1088_v24 = vpop.f32.mrb[1].mxu1 }
 0x32c   : > { %v431_v25 = vpop.f32.mrb[2].mxu1 }
 0x32d   : > { %v1093_v26 = vpop.f32.mrb[3].mxu1  ;;  %v435_v27 = vsel %vm191_vm1, %v431_v25, -inf }
 0x32e   : > { %436 = vmax.xlane.f32.xlu1 %v435_v27 }
 0x330   : > { %v605_v28 = vpop.f32.mrb[4].mxu1 }
 0x331   : > { %v1103_v29 = vpop.f32.mrb[5].mxu1  ;;  %v609_v30 = vsel %vm191_vm1, %v605_v28, -inf }
 0x332   : > { %610 = vmax.xlane.f32.xlu0 %v609_v30 }
 0x334   : > { %v779_v31 = vpop.f32.mrb[6].mxu1 }
 0x335   : > { %v1113_v32 = vpop.f32.mrb[7].mxu1  ;;  %v783_v33 = vsel %vm191_vm1, %v779_v31, -inf }
 0x336   : > { %784 = vmax.xlane.f32.xlu1 %v783_v33 }
 0x3bb   : > { %v437_v34 = vpop.xlane.xlu1 %436 }
 0x3bc   : > { %v438_v35 = vsub.f32 %v431_v25, %v437_v34 }
 0x3be   : > { %v439_v36 = vmul.f32 1.442695, %v438_v35 }
 0x3bf   : > { %v611_v37 = vpop.xlane.xlu0 %610 }
 0x3c0   : > { %1199 = vpow2.f32 %v439_v36  ;;  %v612_v38 = vsub.f32 %v605_v28, %v611_v37 }
 0x3c2   : > { %v613_v39 = vmul.f32 1.442695, %v612_v38 }
 0x3c3   : > { %v785_v40 = vpop.xlane.xlu1 %784 }
 0x3c4   : > { %1201 = vpow2.f32 %v613_v39  ;;  %v786_v41 = vsub.f32 %v779_v31, %v785_v40 }
 0x3c6   : > { %v787_v42 = vmul.f32 1.442695, %v786_v41 }
 0x3c8   : > { %1203 = vpow2.f32 %v787_v42 }
 0x3ca   : > { %v1200_v43 = vpop.eup %1199 }
 0x3cb   : > { %v441_v44 = vsel %vm191_vm1, %v1200_v43, 0.0 }
 0x3cc   : > { %442 = vadd.xlane.f32.xlu1 %v441_v44 }
 0x3ce   : > { %v1202_v45 = vpop.eup %1201 }
 0x3cf   : > { %v615_v46 = vsel %vm191_vm1, %v1202_v45, 0.0 }
 0x3d0   : > { %616 = vadd.xlane.f32.xlu0 %v615_v46 }
 0x3d2   : > { %v1204_v47 = vpop.eup %1203 }
 0x3d3   : > { %v789_v48 = vsel %vm191_vm1, %v1204_v47, 0.0 }
 0x3d4   : > { %790 = vadd.xlane.f32.xlu1 %v789_v48 }
 0x459   : > { %v443_v49 = vpop.xlane.xlu1 %442 }
 0x45a   : > { %1205 = vrcp.f32 %v443_v49 }
 0x45d   : > { %v617_v50 = vpop.xlane.xlu0 %616 }
 0x45e   : > { %1207 = vrcp.f32 %v617_v50 }
 0x461   : > { %v791_v51 = vpop.xlane.xlu1 %790 }
 0x462   : > { %1209 = vrcp.f32 %v791_v51 }
 0x464   : > { %v1206_v52 = vpop.eup %1205 }
 0x465   : > { %v445_v53 = vmul.f32 %v1206_v52, %v443_v49 }
 0x467   : > { %v446_v54 = vsub.f32 2.0, %v445_v53 }
 0x468   : > { %v1208_v55 = vpop.eup %1207 }
 0x469   : > { %v447_v56 = vmul.f32 %v1206_v52, %v446_v54  ;;  %v619_v57 = vmul.f32 %v1208_v55, %v617_v50 }
 0x46b   : > { %v448_v58 = vmul.f32 %v1200_v43, %v447_v56  ;;  %v620_v59 = vsub.f32 2.0, %v619_v57 }
 0x46c   : > { %v1210_v60 = vpop.eup %1209 }
 0x46d   : > { %1046 = vst.msk [vmem:[%s1521_s7 + $0x8] sm:$0xff] %vm191_vm1, %v448_v58  ;;  %v621_v61 = vmul.f32 %v1208_v55, %v620_v59  ;;  %v793_v62 = vmul.f32 %v1210_v60, %v791_v51  ;;  %1097 = vmatmul.mubr.msk.f32.vlgmr.msra.gmra.mrb[2].mxu0 %vm191_vm1, %v448_v58 }
 0x46e   : > { %1105 = vmatpush3.msra.mxu0 %v1530_v20  ;;  %1106 = vmatprep.mubr.msk.f32.mxu0 %vm1359_vm0, %v1358_v0 }
 0x46f   : > { %v622_v63 = vmul.f32 %v1202_v45, %v621_v61  ;;  %v794_v1 = vsub.f32 2.0, %v793_v62  ;;  %1114 = vmatprep.subr.mxu0 %v1358_v0 }
 0x471   : > { %1050 = vst.msk [vmem:[%s1521_s7 + $0x10] sm:$0xff] %vm191_vm1, %v622_v63  ;;  %v795_v2 = vmul.f32 %v1210_v60, %v794_v1  ;;  %1107 = vmatmul.mubr.msk.f32.vlgmr.msra.gmra.mrb[4].mxu0 %vm191_vm1, %v622_v63 }
 0x472   : > { %1115 = vmatpush3.msra.mxu0 %v1532_v21  ;;  %1116 = vmatprep.mubr.msk.f32.mxu0 %vm1359_vm0, %v1358_v0 }
 0x473   : > { %v796_v3 = vmul.f32 %v1204_v47, %v795_v2 }
 0x475   : > { %1054 = vst.msk [vmem:[%s1521_s7 + $0x18] sm:$0xff] %vm191_vm1, %v796_v3  ;;  %1117 = vmatmul.mubr.msk.f32.vlgmr.msra.gmra.mrb[6].mxu0 %vm191_vm1, %v796_v3 }
 0x540   : > { %v519_v4 = vpop.f32.mrb[2].mxu0 }
 0x541   : > { %526 = vrot.lane.b32.xlu0 %v519_v4, %s1363_s25  ;;  %v1098_v0 = vpop.f32.mrb[3].mxu0 }
 0x542   : > { %1254 = shalt.err (!%p1251_p6)
}
 0x543   : > { %s1255_s21 = scalar_lea.hbm %s1579_s20, 512  ;;  %s1259_s6 = scalar_lea.hbm %s1668_s2, 1024 }
 0x544   : > { %p1256_p4 = scmp.ne.s32.totalorder %s1579_s20, %s1255_s21  ;;  %p1260_p1 = scmp.lt.u32.totalorder %s1579_s20, %s1668_s2 }
 0x545   : > { %p1261_p2 = scmp.lt.u32.totalorder %s1259_s6, %s1255_s21  ;;  %p1263_p8 = scmp.lt.u32.totalorder %s1255_s21, %s1579_s20 }
 0x546   : > { %p1257_p10 = pnand %p1256_p4, %p1677_p9 }
 0x547   : > { %p1262_p5 = por %p1261_p2, %p1260_p1 }
 0x548   : > { %p1258_p12 = pneg %p1257_p10 }
 0x549   : > { %p1264_p11 = por %p1263_p8, %p1262_p5 }
 0x54b   : > { %p1265_p0 = pnand %p1264_p11, %p1258_p12 }
 0x54d   : > { %1268 = shalt.err (!%p1265_p0)
}
 0x54e   : > { %s1365_s18 = smov 128   ;;  %v693_v5 = vpop.f32.mrb[4].mxu0  ;;  %s1366_s19 = smov 16   ;;  %vm529_vm2 = vcmask 130112   ;;  %vm703_vm3 = vcmask 195712   ;;  %vm877_vm4 = vcmask 261312  }
 0x54f   : > { %1122 = dma.vmem_to_hbm [thread:$0]  (%p1677_p9), %s1581_s16, 512, %s1579_s20, %s885_s26, %s1365_s18, %s1365_s18, %s1363_s25   ;;  %v1108_v6 = vpop.f32.mrb[5].mxu0 }
 0x550   : > { %700 = vrot.lane.b32.xlu1 %v693_v5, %s1366_s19  ;;  %v867_v7 = vpop.f32.mrb[6].mxu0  ;;  %s1367_s27 = smov 24   ;;  %s1057_s29 = sshll.u32 %s1347_s12, 7 }
 0x551   : > { %v1118_v8 = vpop.f32.mrb[7].mxu0  ;;  %s899_s3 = sshll.u32 %s1548_s8, 4  ;;  %s1616_s25 = scalar_lea.hbm %s1667_s1, %s1057_s29  ;;  %s1618_s3 = int_to_ptr.vmem [resolvable:$true] %s899_s3 }
 0x552   : > { %s880_s26 = scalar_lea.sflag [#allocation4], %s1495_s28  ;;  %s1269_s5 = scalar_lea.vmem %s1618_s3, 128 }
 0x553   : > { %p1270_p7 = scmp.ne.s32.totalorder %s1618_s3, %s1269_s5  ;;  %s1368_s12 = smov [#allocation5]  }
 0x554   : > { %874 = vrot.lane.b32.xlu1 %v867_v7, %s1367_s27  ;;  %s1273_s21 = sshll.u32 %s1368_s12, 4  ;;  %s1274_s21 = int_to_ptr.vmem [resolvable:$false] %s1273_s21 }
 0x555   : > { %p1271_p13 = pnand %p1270_p7, %p1677_p9  ;;  %s1275_s30 = scalar_lea.vmem %s1274_s21, 256 }
 0x556   : > { %p1276_p6 = scmp.lt.s32.totalorder %s1618_s3, %s1274_s21  ;;  %p1277_p4 = scmp.lt.s32.totalorder %s1275_s30, %s1269_s5 }
 0x557   : > { %p1272_p3 = pneg %p1271_p13 }
 0x558   : > { %p1278_p10 = por %p1277_p4, %p1276_p6 }
 0x55a   : > { %p1279_p12 = pnand %p1278_p10, %p1272_p3 }
 0x5b3   : > { %v527_v9 = vpop.permute.xlu0 %526 }
 0x5b4   : > { %530 = vst.msk [vmem:[%s1548_s8] sm:$0xff] %vm529_vm2, %v527_v9 }
 0x5c2   : > { %v701_v10 = vpop.permute.xlu1 %700 }
 0x5c3   : > { %704 = vst.msk [vmem:[%s1548_s8] sm:$0xff] %vm703_vm3, %v701_v10 }
 0x5c6   : > { %v875_v11 = vpop.permute.xlu1 %874 }
 0x5c7   : > { %878 = vst.msk [vmem:[%s1548_s8] sm:$0xff] %vm877_vm4, %v875_v11 }
 0x5c8   : > { %1282 = shalt.err (!%p1279_p12)
}
 0x5c9   : > { %s1283_s28 = scalar_lea.hbm %s1616_s25, 128  ;;  %s1287_s6 = scalar_lea.hbm %s1667_s1, 256 }
 0x5ca   : > { %p1284_p1 = scmp.ne.s32.totalorder %s1616_s25, %s1283_s28  ;;  %p1288_p8 = scmp.lt.u32.totalorder %s1616_s25, %s1667_s1 }
 0x5cb   : > { %p1289_p11 = scmp.lt.u32.totalorder %s1287_s6, %s1283_s28  ;;  %p1291_p7 = scmp.lt.u32.totalorder %s1283_s28, %s1616_s25 }
 0x5cc   : > { %p1285_p2 = pnand %p1284_p1, %p1677_p9 }
 0x5cd   : > { %p1290_p0 = por %p1289_p11, %p1288_p8 }
 0x5ce   : > { %p1286_p5 = pneg %p1285_p2 }
 0x5cf   : > { %p1292_p13 = por %p1291_p7, %p1290_p0 }
 0x5d1   : > { %p1293_p3 = pnand %p1292_p13, %p1286_p5 }
 0x5d3   : > { %1296 = shalt.err (!%p1293_p3)
}
 0x5d4   : > { %1121 = dma.vmem_to_hbm [thread:$0]  (%p1677_p9), %s1618_s3, 128, %s1616_s25, %s880_s26  }
 0x5d5 PF: > { %s928_s18 = sand.u32 1, %s1335_s9   ;;  %p1678_p6 = scmp.ne.s32.totalorder %s1673_s24, 0 }
 0x5d6   : > { %p1679_p4 = scmp.ge.s32.totalorder %s1355_s14, 2  ;;  %s929_s19 = scalar_lea.sflag [#allocation4], %s928_s18 }
 0x5d8   : > { %p1130_p10 = pnand %p1679_p4, %p1678_p6 }
 0x5da   : > { %1326 = dma.done.wait (!%p1130_p10), %s929_s19, 128  }
 0x5db   : > { %1328 = vsyncadd (!%p1130_p10), %s929_s19, 4294967168  ;;  %s938_s27 = scalar_lea.sflag [#allocation7], %s928_s18 }
 0x5dc   : > { %1330 = dma.done.wait (!%p1130_p10), %s938_s27, 512  }
 0x5dd   : > { %1332 = vsyncadd (!%p1130_p10), %s938_s27, 4294966784  ;;  %s22_s14 = sadd.s32 1, %s1355_s14   ;;  %s1680_s9 = smov %s1339_s10 }
 0x5de   : > { %p19_p12 = scmp.ge.s32.totalorder %s22_s14, 4   ;;  %s1681_s10 = smov %s1343_s11 }
 0x5df   : > { %s1682_s11 = smov %s1440_s23  ;;  %s1683_s12 = smov %s1351_s13 }
 0x5e0   : > { %s1684_s13 = smov %s1686_s17  ;;  %21 = sbr.rel (!%p19_p12) target bundleno = 8 (0x8), region = 89 }
 0x5e7   :  { %943 = vsyncpa [#allocation3], 1 }
 0x5e8   :  { %945 = vsyncpa [#allocation3 + $0x1], 1 }
 0x5e9   :  { %946 = vsyncpa [#allocation4], 1 }
 0x5ea   :  { %948 = vsyncpa [#allocation4 + $0x1], 1 }
 0x5eb   :  { %949 = vsyncpa [#allocation7], 1 }
 0x5ec   :  { %951 = vsyncpa [#allocation7 + $0x1], 1 }

</bundles_post_ra>
